<compile_context>
chip_gen: v7x
topology: tpu7x:2x2x1
jax: 0.10.0
libtpu: 0.0.40
codegen_flags: <defaults>
</compile_context>

<pallas_src>
import functools

import jax
import jax.numpy as jnp
from jax.experimental import pallas as pl
from jax.experimental.pallas import tpu as pltpu


def _round_up(x: int, m: int) -> int:
    return ((x + m - 1) // m) * m


def make_actor_kernel(maxaction: float, bf16_epilogue: bool):
    """Fused 3-layer MLP kernel; maxaction folded in as a compile-time constant."""
    maxaction = float(maxaction)

    def actor_kernel(state_ref, w1_ref, b1_ref, w2_ref, b2_ref, w3_ref, b3_ref,
                     out_ref):
        w_dtype = w1_ref.dtype  # f32 or bf16; activations cast to match for the MXU

        def layer(h, w_ref, b_ref, *, last):
            # MXU matmul with f32 accumulation, f32 bias add.
            acc = jnp.dot(h.astype(w_dtype), w_ref[...],
                          preferred_element_type=jnp.float32) + b_ref[...]
            if bf16_epilogue and not last:
                # v6e/v7x: EUP tanh is bf16-native -> ~2x epilogue throughput,
                # halves activation vregs, and removes the extra cast before
                # the next matmul. Not used on the f32-weight / v5e path.
                return jnp.tanh(acc.astype(jnp.bfloat16))
            return jnp.tanh(acc)

        a = layer(state_ref[...], w1_ref, b1_ref, last=False)
        a = layer(a, w2_ref, b2_ref, last=False)
        a = layer(a, w3_ref, b3_ref, last=True)          # final tanh in f32
        out_ref[...] = (a * maxaction).astype(out_ref.dtype)

    return actor_kernel


def init_actor_params(key, state_dim, net_width, action_dim,
                      weight_dtype=jnp.float32):
    """Deterministic init. Weights [in_dim, out_dim] (optionally bf16); biases [1, out] f32."""
    k1, k2, k3, k4, k5, k6 = jax.random.split(key, 6)
    scale = lambda fan_in: 1.0 / jnp.sqrt(float(fan_in))
    u = lambda k, shp, s: jax.random.uniform(k, shp, jnp.float32, -s, s)
    return {
        "w1": u(k1, (state_dim, net_width), scale(state_dim)).astype(weight_dtype),
        "b1": u(k2, (1, net_width), scale(state_dim)),
        "w2": u(k3, (net_width, net_width), scale(net_width)).astype(weight_dtype),
        "b2": u(k4, (1, net_width), scale(net_width)),
        "w3": u(k5, (net_width, action_dim), scale(net_width)).astype(weight_dtype),
        "b3": u(k6, (1, action_dim), scale(net_width)),
    }


def prepare_actor_params(params):
    """Zero-pad hidden width and action width to multiples of 128 lanes.

    Call ONCE after init (not per forward call). Padded lanes are exact zeros,
    so tanh(0) = 0 flows through and the wrapper slices them off.
    """
    S, H = params["w1"].shape
    A = params["w3"].shape[1]
    H_pad = _round_up(H, 128)
    A_pad = _round_up(A, 128)
    if H_pad == H and A_pad == A:
        return dict(params)
    return {
        "w1": jnp.pad(params["w1"], ((0, 0), (0, H_pad - H))),
        "b1": jnp.pad(params["b1"], ((0, 0), (0, H_pad - H))),
        "w2": jnp.pad(params["w2"], ((0, H_pad - H), (0, H_pad - H))),
        "b2": jnp.pad(params["b2"], ((0, 0), (0, H_pad - H))),
        "w3": jnp.pad(params["w3"], ((0, H_pad - H), (0, A_pad - A))),
        "b3": jnp.pad(params["b3"], ((0, 0), (0, A_pad - A))),
    }


def actor_forward(state, params, maxaction, *, action_dim=None, block_b: int = 512,
                  bf16_epilogue=None):
    """state: [B, state_dim]. params: pre-transposed (ideally pre-padded) weights.

    action_dim: true (unpadded) action width; defaults to params["w3"].shape[1]
    (only correct if params were NOT padded). Returns [B, action_dim] f32 actions.
    """
    B, S = state.shape
    if action_dim is None:
        action_dim = int(params["w3"].shape[1])

    # Lazy fallback if the caller didn't pre-pad (prefer prepare_actor_params once).
    if (params["w1"].shape[1] % 128) or (params["w3"].shape[1] % 128):
        params = prepare_actor_params(params)

    H_pad = params["w1"].shape[1]
    A_pad = params["w3"].shape[1]
    w_dtype = params["w1"].dtype
    if bf16_epilogue is None:
        # Only take the bf16 tanh path when weights are bf16 (v6e/v7x perf path).
        bf16_epilogue = (w_dtype == jnp.bfloat16)

    # --- Batch tiling: big tiles amortize the ~0.35us per-step overhead, but
    # keep >= 2 grid steps (when B allows) so v7x megacore shards the batch. ---
    TB = max(8, min(block_b, B))
    if B > 8:
        TB = min(TB, -(-B // 2))          # ceil(B/2) -> at least 2 grid steps
    TB = _round_up(TB, 8)
    B_pad = _round_up(B, TB)
    grid = (B_pad // TB,)
    state_p = state if B_pad == B else jnp.pad(state, ((0, B_pad - B), (0, 0)))

    # --- Cost estimate so XLA can overlap this kernel with neighbouring ops. ---
    weight_keys = ("w1", "b1", "w2", "b2", "w3", "b3")
    bytes_w = sum(int(params[k].size) * params[k].dtype.itemsize for k in weight_keys)
    flops = 2 * B_pad * (S * H_pad + H_pad * H_pad + H_pad * A_pad)
    transcendentals = B_pad * (2 * H_pad + A_pad)
    bytes_accessed = (bytes_w
                      + int(state_p.size) * state_p.dtype.itemsize
                      + B_pad * A_pad * 4)
    cost = pl.CostEstimate(flops=flops, transcendentals=transcendentals,
                           bytes_accessed=bytes_accessed)

    # --- VMEM budget: resident weights + double-buffered state/out tiles +
    # f32 activation scratch. Only raise the scoped limit if we need to. ---
    vmem_needed = (bytes_w
                   + 2 * TB * (S + A_pad) * 4     # double-buffered state/out tiles
                   + 2 * TB * H_pad * 4)          # activation working set (f32)
    vmem_limit = None
    if vmem_needed > (24 << 20):
        vmem_limit = min(_round_up(int(vmem_needed * 1.25), 1 << 20), 64 << 20)
    compiler_params = pltpu.CompilerParams(
        dimension_semantics=("parallel",),
        vmem_limit_bytes=vmem_limit)

    kernel = make_actor_kernel(maxaction, bf16_epilogue)
    args = (state_p, params["w1"], params["b1"], params["w2"], params["b2"],
            params["w3"], params["b3"])

    def build(single_buffer_weights: bool):
        if single_buffer_weights:
            # Constant index_map -> weights are DMA'd once; single-buffer them
            # so they don't waste a second VMEM copy.
            resident = lambda a: pl.BlockSpec(a.shape, lambda i: (0,) * a.ndim,
                                              pipeline_mode=pl.Buffered(1))
        else:
            resident = lambda a: pl.BlockSpec(a.shape, lambda i: (0,) * a.ndim)
        return pl.pallas_call(
            kernel,
            out_shape=jax.ShapeDtypeStruct((B_pad, A_pad), jnp.float32),
            grid_spec=pltpu.PrefetchScalarGridSpec(
                num_scalar_prefetch=0,
                grid=grid,
                in_specs=[
                    pl.BlockSpec((TB, S), lambda i: (i, 0)),   # state tile per step
                    resident(params["w1"]), resident(params["b1"]),
                    resident(params["w2"]), resident(params["b2"]),
                    resident(params["w3"]), resident(params["b3"]),
                ],
                out_specs=pl.BlockSpec((TB, A_pad), lambda i: (i, 0)),
            ),
            compiler_params=compiler_params,
            cost_estimate=cost,
        )

    try:
        out_padded = build(single_buffer_weights=True)(*args)
    except Exception:
        # Fallback for Pallas versions without Buffered(1) on constant-index specs.
        out_padded = build(single_buffer_weights=False)(*args)

    return out_padded[:B, :action_dim]


def _reference(state, params, maxaction, *, bf16_epilogue=None):
    """Pure-JAX reference mirroring the kernel's dtype path (f32 accumulate)."""
    wd = params["w1"].dtype
    if bf16_epilogue is None:
        bf16_epilogue = (wd == jnp.bfloat16)
    dot = functools.partial(jnp.dot, preferred_element_type=jnp.float32)

    def act(x):
        return jnp.tanh(x.astype(jnp.bfloat16)) if bf16_epilogue else jnp.tanh(x)

    a = act(dot(state.astype(wd), params["w1"]) + params["b1"])
    a = act(dot(a.astype(wd), params["w2"]) + params["b2"])
    a = jnp.tanh(dot(a.astype(wd), params["w3"]) + params["b3"])
    return a * maxaction


if __name__ == "__main__":
    # Small shapes consistent with a TD3 actor.
    batch = 8
    state_dim = 16
    net_width = 32
    action_dim = 4
    maxaction = 2.0

    key = jax.random.PRNGKey(0)
    k_state, k_params, k_state2 = jax.random.split(key, 3)
    state = jax.random.normal(k_state, (batch, state_dim), dtype=jnp.float32)

    # --- f32 weights: tight check (f32 epilogue). Padding done once, up front. ---
    params_f32 = init_actor_params(k_params, state_dim, net_width, action_dim,
                                   weight_dtype=jnp.float32)
    padded_f32 = prepare_actor_params(params_f32)
    out = jax.block_until_ready(
        actor_forward(state, padded_f32, maxaction, action_dim=action_dim))
    ref = _reference(state, params_f32, maxaction)
    assert out.shape == (batch, action_dim)
    assert jnp.allclose(out, ref, atol=1e-5), "f32 mismatch vs reference"

    # --- bf16 weights + bf16 tanh epilogue (v6e/v7x perf path), with a batch
    # large enough to exercise a multi-step (>=2) grid: loose check. ---
    params_bf16 = init_actor_params(k_params, state_dim, net_width, action_dim,
                                    weight_dtype=jnp.bfloat16)
    padded_bf16 = prepare_actor_params(params_bf16)
    batch2 = 24
    state2 = jax.random.normal(k_state2, (batch2, state_dim), dtype=jnp.float32)
    out_bf = jax.block_until_ready(
        actor_forward(state2, padded_bf16, maxaction, action_dim=action_dim))
    ref_bf = _reference(state2, params_bf16, maxaction)
    assert out_bf.shape == (batch2, action_dim)
    assert jnp.allclose(out_bf, ref_bf, atol=2e-2), "bf16 mismatch vs reference"

    print("KERNEL_OK")
</pallas_src>

<mosaic_0001>
module attributes {stable_mosaic.version = 11 : i64} {
  func.func @actor_kernel(%arg0: i32, %arg1: memref<8x16xf32, #tpu.memory_space<vmem>>, %arg2: memref<16x128xf32, #tpu.memory_space<vmem>>, %arg3: memref<1x128xf32, #tpu.memory_space<vmem>>, %arg4: memref<128x128xf32, #tpu.memory_space<vmem>>, %arg5: memref<1x128xf32, #tpu.memory_space<vmem>>, %arg6: memref<128x128xf32, #tpu.memory_space<vmem>>, %arg7: memref<1x128xf32, #tpu.memory_space<vmem>>, %arg8: memref<8x128xf32, #tpu.memory_space<vmem>>) attributes {dimension_semantics = [#tpu.dimension_semantics<parallel>], iteration_bounds = array<i64: 1>, scalar_prefetch = 0 : i64, scratch_operands = 0 : i64, tpu.core_type = #tpu.core_type<tc>, window_params = [{transform_indices = @transform_0, window_bounds = array<i64: 8, 16>}, {pipeline_mode = #tpu.pipeline_mode<synchronous>, transform_indices = @transform_1, window_bounds = array<i64: 16, 128>}, {pipeline_mode = #tpu.pipeline_mode<synchronous>, transform_indices = @transform_2, window_bounds = array<i64: 1, 128>}, {pipeline_mode = #tpu.pipeline_mode<synchronous>, transform_indices = @transform_3, window_bounds = array<i64: 128, 128>}, {pipeline_mode = #tpu.pipeline_mode<synchronous>, transform_indices = @transform_4, window_bounds = array<i64: 1, 128>}, {pipeline_mode = #tpu.pipeline_mode<synchronous>, transform_indices = @transform_5, window_bounds = array<i64: 128, 128>}, {pipeline_mode = #tpu.pipeline_mode<synchronous>, transform_indices = @transform_6, window_bounds = array<i64: 1, 128>}, {transform_indices = @transform_7, window_bounds = array<i64: 8, 128>}]} {
    %c0 = arith.constant 0 : index
    %c0_0 = arith.constant 0 : index
    %0 = vector.load %arg1[%c0, %c0_0] : memref<8x16xf32, #tpu.memory_space<vmem>>, vector<8x16xf32>
    %c0_1 = arith.constant 0 : index
    %c0_2 = arith.constant 0 : index
    %1 = vector.load %arg2[%c0_1, %c0_2] : memref<16x128xf32, #tpu.memory_space<vmem>>, vector<16x128xf32>
    %cst = arith.constant dense<0.000000e+00> : vector<8x128xf32>
    %2 = tpu.matmul %0, %1, %cst {dimension_numbers = #tpu.dot_dimension_numbers<[1], [0], [0], [1], [0, 0, 1, 1], [], []>} : vector<8x16xf32>, vector<16x128xf32>, vector<8x128xf32> -> vector<8x128xf32>
    %c0_3 = arith.constant 0 : index
    %c0_4 = arith.constant 0 : index
    %3 = vector.load %arg3[%c0_3, %c0_4] : memref<1x128xf32, #tpu.memory_space<vmem>>, vector<1x128xf32>
    %4 = vector.broadcast %3 : vector<1x128xf32> to vector<8x128xf32>
    %5 = arith.addf %2, %4 : vector<8x128xf32>
    %6 = math.tanh %5 : vector<8x128xf32>
    %c0_5 = arith.constant 0 : index
    %c0_6 = arith.constant 0 : index
    %7 = vector.load %arg4[%c0_5, %c0_6] : memref<128x128xf32, #tpu.memory_space<vmem>>, vector<128x128xf32>
    %cst_7 = arith.constant dense<0.000000e+00> : vector<8x128xf32>
    %8 = tpu.matmul %6, %7, %cst_7 {dimension_numbers = #tpu.dot_dimension_numbers<[1], [0], [0], [1], [0, 0, 1, 1], [], []>} : vector<8x128xf32>, vector<128x128xf32>, vector<8x128xf32> -> vector<8x128xf32>
    %c0_8 = arith.constant 0 : index
    %c0_9 = arith.constant 0 : index
    %9 = vector.load %arg5[%c0_8, %c0_9] : memref<1x128xf32, #tpu.memory_space<vmem>>, vector<1x128xf32>
    %10 = vector.broadcast %9 : vector<1x128xf32> to vector<8x128xf32>
    %11 = arith.addf %8, %10 : vector<8x128xf32>
    %12 = math.tanh %11 : vector<8x128xf32>
    %c0_10 = arith.constant 0 : index
    %c0_11 = arith.constant 0 : index
    %13 = vector.load %arg6[%c0_10, %c0_11] : memref<128x128xf32, #tpu.memory_space<vmem>>, vector<128x128xf32>
    %cst_12 = arith.constant dense<0.000000e+00> : vector<8x128xf32>
    %14 = tpu.matmul %12, %13, %cst_12 {dimension_numbers = #tpu.dot_dimension_numbers<[1], [0], [0], [1], [0, 0, 1, 1], [], []>} : vector<8x128xf32>, vector<128x128xf32>, vector<8x128xf32> -> vector<8x128xf32>
    %c0_13 = arith.constant 0 : index
    %c0_14 = arith.constant 0 : index
    %15 = vector.load %arg7[%c0_13, %c0_14] : memref<1x128xf32, #tpu.memory_space<vmem>>, vector<1x128xf32>
    %16 = vector.broadcast %15 : vector<1x128xf32> to vector<8x128xf32>
    %17 = arith.addf %14, %16 : vector<8x128xf32>
    %18 = math.tanh %17 : vector<8x128xf32>
    %cst_15 = arith.constant 2.000000e+00 : f32
    %19 = vector.broadcast %cst_15 : f32 to vector<8x128xf32>
    %20 = arith.mulf %18, %19 : vector<8x128xf32>
    %c0_16 = arith.constant 0 : index
    %c0_17 = arith.constant 0 : index
    %21 = vector.load %arg8[%c0_16, %c0_17] : memref<8x128xf32, #tpu.memory_space<vmem>>, vector<8x128xf32>
    tpu.vector_store %arg8[%c0_16, %c0_17], %20 {strides = array<i32>} : memref<8x128xf32, #tpu.memory_space<vmem>>, vector<8x128xf32>,
    return
  }
  func.func @transform_0(%arg0: i32) -> (i32, i32) {
    %c0_i32 = arith.constant 0 : i32
    %c0_i32_0 = arith.constant 0 : i32
    return %arg0, %c0_i32 : i32, i32
  }
  func.func @transform_1(%arg0: i32) -> (i32, i32) {
    %c0_i32 = arith.constant 0 : i32
    %c0_i32_0 = arith.constant 0 : i32
    %c0_i32_1 = arith.constant 0 : i32
    return %c0_i32, %c0_i32_0 : i32, i32
  }
  func.func @transform_2(%arg0: i32) -> (i32, i32) {
    %c0_i32 = arith.constant 0 : i32
    %c0_i32_0 = arith.constant 0 : i32
    %c0_i32_1 = arith.constant 0 : i32
    return %c0_i32, %c0_i32_0 : i32, i32
  }
  func.func @transform_3(%arg0: i32) -> (i32, i32) {
    %c0_i32 = arith.constant 0 : i32
    %c0_i32_0 = arith.constant 0 : i32
    %c0_i32_1 = arith.constant 0 : i32
    return %c0_i32, %c0_i32_0 : i32, i32
  }
  func.func @transform_4(%arg0: i32) -> (i32, i32) {
    %c0_i32 = arith.constant 0 : i32
    %c0_i32_0 = arith.constant 0 : i32
    %c0_i32_1 = arith.constant 0 : i32
    return %c0_i32, %c0_i32_0 : i32, i32
  }
  func.func @transform_5(%arg0: i32) -> (i32, i32) {
    %c0_i32 = arith.constant 0 : i32
    %c0_i32_0 = arith.constant 0 : i32
    %c0_i32_1 = arith.constant 0 : i32
    return %c0_i32, %c0_i32_0 : i32, i32
  }
  func.func @transform_6(%arg0: i32) -> (i32, i32) {
    %c0_i32 = arith.constant 0 : i32
    %c0_i32_0 = arith.constant 0 : i32
    %c0_i32_1 = arith.constant 0 : i32
    return %c0_i32, %c0_i32_0 : i32, i32
  }
  func.func @transform_7(%arg0: i32) -> (i32, i32) {
    %c0_i32 = arith.constant 0 : i32
    %c0_i32_0 = arith.constant 0 : i32
    return %arg0, %c0_i32 : i32, i32
  }
}

module attributes {stable_mosaic.version = 11 : i64} {
  func.func @actor_kernel(%arg0: i32, %arg1: memref<8x16xf32, #tpu.memory_space<vmem>>, %arg2: memref<16x128xf32, #tpu.memory_space<vmem>>, %arg3: memref<1x128xf32, #tpu.memory_space<vmem>>, %arg4: memref<128x128xf32, #tpu.memory_space<vmem>>, %arg5: memref<1x128xf32, #tpu.memory_space<vmem>>, %arg6: memref<128x128xf32, #tpu.memory_space<vmem>>, %arg7: memref<1x128xf32, #tpu.memory_space<vmem>>, %arg8: memref<8x128xf32, #tpu.memory_space<vmem>>) attributes {dimension_semantics = [#tpu.dimension_semantics<parallel>], iteration_bounds = array<i64: 1>, scalar_prefetch = 0 : i64, scratch_operands = 0 : i64, tpu.core_type = #tpu.core_type<tc>, window_params = [{transform_indices = @transform_0, window_bounds = array<i64: 8, 16>}, {pipeline_mode = #tpu.pipeline_mode<synchronous>, transform_indices = @transform_1, window_bounds = array<i64: 16, 128>}, {pipeline_mode = #tpu.pipeline_mode<synchronous>, transform_indices = @transform_2, window_bounds = array<i64: 1, 128>}, {pipeline_mode = #tpu.pipeline_mode<synchronous>, transform_indices = @transform_3, window_bounds = array<i64: 128, 128>}, {pipeline_mode = #tpu.pipeline_mode<synchronous>, transform_indices = @transform_4, window_bounds = array<i64: 1, 128>}, {pipeline_mode = #tpu.pipeline_mode<synchronous>, transform_indices = @transform_5, window_bounds = array<i64: 128, 128>}, {pipeline_mode = #tpu.pipeline_mode<synchronous>, transform_indices = @transform_6, window_bounds = array<i64: 1, 128>}, {transform_indices = @transform_7, window_bounds = array<i64: 8, 128>}]} {
    %c0 = arith.constant 0 : index
    %c0_0 = arith.constant 0 : index
    %0 = vector.load %arg1[%c0, %c0_0] : memref<8x16xf32, #tpu.memory_space<vmem>>, vector<8x16xf32>
    %c0_1 = arith.constant 0 : index
    %c0_2 = arith.constant 0 : index
    %1 = vector.load %arg2[%c0_1, %c0_2] : memref<16x128xf32, #tpu.memory_space<vmem>>, vector<16x128xf32>
    %cst = arith.constant dense<0.000000e+00> : vector<8x128xf32>
    %2 = tpu.matmul %0, %1, %cst {dimension_numbers = #tpu.dot_dimension_numbers<[1], [0], [0], [1], [0, 0, 1, 1], [], []>} : vector<8x16xf32>, vector<16x128xf32>, vector<8x128xf32> -> vector<8x128xf32>
    %c0_3 = arith.constant 0 : index
    %c0_4 = arith.constant 0 : index
    %3 = vector.load %arg3[%c0_3, %c0_4] : memref<1x128xf32, #tpu.memory_space<vmem>>, vector<1x128xf32>
    %4 = vector.broadcast %3 : vector<1x128xf32> to vector<8x128xf32>
    %5 = arith.addf %2, %4 : vector<8x128xf32>
    %6 = math.tanh %5 : vector<8x128xf32>
    %c0_5 = arith.constant 0 : index
    %c0_6 = arith.constant 0 : index
    %7 = vector.load %arg4[%c0_5, %c0_6] : memref<128x128xf32, #tpu.memory_space<vmem>>, vector<128x128xf32>
    %cst_7 = arith.constant dense<0.000000e+00> : vector<8x128xf32>
    %8 = tpu.matmul %6, %7, %cst_7 {dimension_numbers = #tpu.dot_dimension_numbers<[1], [0], [0], [1], [0, 0, 1, 1], [], []>} : vector<8x128xf32>, vector<128x128xf32>, vector<8x128xf32> -> vector<8x128xf32>
    %c0_8 = arith.constant 0 : index
    %c0_9 = arith.constant 0 : index
    %9 = vector.load %arg5[%c0_8, %c0_9] : memref<1x128xf32, #tpu.memory_space<vmem>>, vector<1x128xf32>
    %10 = vector.broadcast %9 : vector<1x128xf32> to vector<8x128xf32>
    %11 = arith.addf %8, %10 : vector<8x128xf32>
    %12 = math.tanh %11 : vector<8x128xf32>
    %c0_10 = arith.constant 0 : index
    %c0_11 = arith.constant 0 : index
    %13 = vector.load %arg6[%c0_10, %c0_11] : memref<128x128xf32, #tpu.memory_space<vmem>>, vector<128x128xf32>
    %cst_12 = arith.constant dense<0.000000e+00> : vector<8x128xf32>
    %14 = tpu.matmul %12, %13, %cst_12 {dimension_numbers = #tpu.dot_dimension_numbers<[1], [0], [0], [1], [0, 0, 1, 1], [], []>} : vector<8x128xf32>, vector<128x128xf32>, vector<8x128xf32> -> vector<8x128xf32>
    %c0_13 = arith.constant 0 : index
    %c0_14 = arith.constant 0 : index
    %15 = vector.load %arg7[%c0_13, %c0_14] : memref<1x128xf32, #tpu.memory_space<vmem>>, vector<1x128xf32>
    %16 = vector.broadcast %15 : vector<1x128xf32> to vector<8x128xf32>
    %17 = arith.addf %14, %16 : vector<8x128xf32>
    %18 = math.tanh %17 : vector<8x128xf32>
    %cst_15 = arith.constant 2.000000e+00 : f32
    %19 = vector.broadcast %cst_15 : f32 to vector<8x128xf32>
    %20 = arith.mulf %18, %19 : vector<8x128xf32>
    %c0_16 = arith.constant 0 : index
    %c0_17 = arith.constant 0 : index
    %21 = vector.load %arg8[%c0_16, %c0_17] : memref<8x128xf32, #tpu.memory_space<vmem>>, vector<8x128xf32>
    tpu.vector_store %arg8[%c0_16, %c0_17], %20 {strides = array<i32>} : memref<8x128xf32, #tpu.memory_space<vmem>>, vector<8x128xf32>,
    return
  }
  func.func @transform_0(%arg0: i32) -> (i32, i32) {
    %c0_i32 = arith.constant 0 : i32
    %c0_i32_0 = arith.constant 0 : i32
    return %arg0, %c0_i32 : i32, i32
  }
  func.func @transform_1(%arg0: i32) -> (i32, i32) {
    %c0_i32 = arith.constant 0 : i32
    %c0_i32_0 = arith.constant 0 : i32
    %c0_i32_1 = arith.constant 0 : i32
    return %c0_i32, %c0_i32_0 : i32, i32
  }
  func.func @transform_2(%arg0: i32) -> (i32, i32) {
    %c0_i32 = arith.constant 0 : i32
    %c0_i32_0 = arith.constant 0 : i32
    %c0_i32_1 = arith.constant 0 : i32
    return %c0_i32, %c0_i32_0 : i32, i32
  }
  func.func @transform_3(%arg0: i32) -> (i32, i32) {
    %c0_i32 = arith.constant 0 : i32
    %c0_i32_0 = arith.constant 0 : i32
    %c0_i32_1 = arith.constant 0 : i32
    return %c0_i32, %c0_i32_0 : i32, i32
  }
  func.func @transform_4(%arg0: i32) -> (i32, i32) {
    %c0_i32 = arith.constant 0 : i32
    %c0_i32_0 = arith.constant 0 : i32
    %c0_i32_1 = arith.constant 0 : i32
    return %c0_i32, %c0_i32_0 : i32, i32
  }
  func.func @transform_5(%arg0: i32) -> (i32, i32) {
    %c0_i32 = arith.constant 0 : i32
    %c0_i32_0 = arith.constant 0 : i32
    %c0_i32_1 = arith.constant 0 : i32
    return %c0_i32, %c0_i32_0 : i32, i32
  }
  func.func @transform_6(%arg0: i32) -> (i32, i32) {
    %c0_i32 = arith.constant 0 : i32
    %c0_i32_0 = arith.constant 0 : i32
    %c0_i32_1 = arith.constant 0 : i32
    return %c0_i32, %c0_i32_0 : i32, i32
  }
  func.func @transform_7(%arg0: i32) -> (i32, i32) {
    %c0_i32 = arith.constant 0 : i32
    %c0_i32_0 = arith.constant 0 : i32
    return %arg0, %c0_i32 : i32, i32
  }
}

</mosaic_0001>

<bundles_post_ra>
// kernel: tpu_custom_call.1
= control target key start
LH: loop header
LB: loop body
LE: loop exit
PB: predicated region body
PF: predicated region fallthrough
CT: control target
= control target key end

     0   :  { %12 = vsyncpa [#allocation3], 0  ;;  %s823_s0 = inlined_call_operand.hbm [shape: f32[8,16], index: 0, kind: input, shape index: {}]   ;;  %s824_s1 = inlined_call_operand.hbm [shape: f32[16,128], index: 1, kind: input, shape index: {}]   ;;  %s825_s2 = inlined_call_operand.vmem [shape: f32[1,128], index: 2, kind: input, shape index: {}]   ;;  %s826_s3 = inlined_call_operand.hbm [shape: f32[128,128], index: 3, kind: input, shape index: {}]   ;;  %s827_s4 = inlined_call_operand.vmem [shape: f32[1,128], index: 4, kind: input, shape index: {}]   ;;  %s828_s5 = inlined_call_operand.hbm [shape: f32[128,128], index: 5, kind: input, shape index: {}]   ;;  %s829_s6 = inlined_call_operand.vmem [shape: f32[1,128], index: 6, kind: input, shape index: {}]   ;;  %s830_s7 = inlined_call_operand.hbm [shape: f32[8,128], index: 7, kind: output, shape index: {}]  }
   0x1   :  { %13 = vsyncpa [#allocation6], 0 }
   0x2   :  { %14 = vsyncpa [#allocation9], 0 }
   0x3   :  { %15 = vsyncpa [#allocation4], 0  ;;  %s675_s24 = smov [#allocation5]   ;;  %s557_s28 = scalar_lea.hbm %s824_s1, 256 }
   0x4   :  { %s31_s25 = sshll.u32 %s675_s24, 4  ;;  %p558_p0 = scmp.ne.s32.totalorder %s824_s1, %s557_s28  ;;  %s32_s25 = int_to_ptr.vmem [resolvable:$true] %s31_s25 }
   0x5   :  { %p561_p1 = scmp.lt.u32.totalorder %s557_s28, %s824_s1 }
   0x7   :  { %p563_p2 = pnand %p561_p1, %p558_p0 }
   0x9   :  { %566 = shalt.err (!%p563_p2)
}
   0xa   :  { %s567_s10 = scalar_lea.vmem %s32_s25, 256  ;;  %p572_p4 = scmp.lt.s32.totalorder %s32_s25, %s32_s25 }
   0xb   :  { %p568_p3 = scmp.ne.s32.totalorder %s32_s25, %s567_s10  ;;  %p573_p5 = scmp.lt.s32.totalorder %s567_s10, %s567_s10 }
   0xd   :  { %p574_p6 = por %p573_p5, %p572_p4 }
   0xf   :  { %p575_p7 = pnand %p574_p6, %p568_p3 }
  0x11   :  { %578 = shalt.err (!%p575_p7)
}
  0x12   :  { %s676_s11 = smov 128   ;;  %s677_s12 = smov 8  }
  0x13   :  { %37 = dma.hbm_to_vmem [thread:$0]  %s824_s1, 256, %s32_s25, [#allocation6], %s676_s11, %s676_s11, %s677_s12  }
  0x14   :  { %s678_s15 = smov [#allocation2]   ;;  %s679_s17 = smov [#allocation7]  }
  0x15   :  { %s22_s16 = sshll.u32 %s678_s15, 4  ;;  %s45_s18 = sshll.u32 %s679_s17, 4  ;;  %s23_s16 = int_to_ptr.vmem [resolvable:$true] %s22_s16  ;;  %s46_s18 = int_to_ptr.vmem [resolvable:$true] %s45_s18 }
  0x16   :  { %s579_s21 = scalar_lea.hbm %s823_s0, 128 }
  0x17   :  { %p580_p8 = scmp.ne.s32.totalorder %s823_s0, %s579_s21  ;;  %p583_p9 = scmp.lt.u32.totalorder %s579_s21, %s823_s0 }
  0x19   :  { %p585_p10 = pnand %p583_p9, %p580_p8 }
  0x1b   :  { %588 = shalt.err (!%p585_p10)
}
  0x1c   :  { %s589_s1 = scalar_lea.vmem %s23_s16, 128  ;;  %p594_p12 = scmp.lt.s32.totalorder %s23_s16, %s23_s16 }
  0x1d   :  { %p590_p11 = scmp.ne.s32.totalorder %s23_s16, %s589_s1  ;;  %p595_p13 = scmp.lt.s32.totalorder %s589_s1, %s589_s1 }
  0x1f   :  { %p596_p0 = por %p595_p13, %p594_p12 }
  0x21   :  { %p597_p1 = pnand %p596_p0, %p590_p11 }
  0x23   :  { %600 = shalt.err (!%p597_p1)
}
  0x24   :  { %25 = dma.hbm_to_vmem [thread:$0]  %s823_s0, 128, %s23_s16, [#allocation3]  }
  0x25   :  { %s601_s30 = scalar_lea.hbm %s826_s3, 2048 }
  0x26   :  { %p602_p2 = scmp.ne.s32.totalorder %s826_s3, %s601_s30  ;;  %p605_p3 = scmp.lt.u32.totalorder %s601_s30, %s826_s3 }
  0x28   :  { %p607_p4 = pnand %p605_p3, %p602_p2 }
  0x2a   :  { %610 = shalt.err (!%p607_p4)
}
  0x2b   :  { %s611_s14 = scalar_lea.vmem %s46_s18, 2048  ;;  %p616_p6 = scmp.lt.s32.totalorder %s46_s18, %s46_s18 }
  0x2c   :  { %p612_p5 = scmp.ne.s32.totalorder %s46_s18, %s611_s14  ;;  %p617_p7 = scmp.lt.s32.totalorder %s611_s14, %s611_s14 }
  0x2e   :  { %p618_p8 = por %p617_p7, %p616_p6 }
  0x30   :  { %p619_p9 = pnand %p618_p8, %p612_p5 }
  0x32   :  { %622 = shalt.err (!%p619_p9)
}
  0x33   :  { %51 = dma.hbm_to_vmem [thread:$0]  %s826_s3, 2048, %s46_s18, [#allocation6], %s676_s11, %s676_s11, %s677_s12  }
  0x34   :  { %s680_s16 = smov [#allocation8]   ;;  %s623_s21 = scalar_lea.hbm %s828_s5, 2048 }
  0x35   :  { %s59_s17 = sshll.u32 %s680_s16, 4  ;;  %p624_p10 = scmp.ne.s32.totalorder %s828_s5, %s623_s21  ;;  %s60_s17 = int_to_ptr.vmem [resolvable:$true] %s59_s17 }
  0x36   :  { %p627_p11 = scmp.lt.u32.totalorder %s623_s21, %s828_s5 }
  0x38   :  { %p629_p12 = pnand %p627_p11, %p624_p10 }
  0x3a   :  { %632 = shalt.err (!%p629_p12)
}
  0x3b   :  { %s633_s1 = scalar_lea.vmem %s60_s17, 2048  ;;  %p638_p0 = scmp.lt.s32.totalorder %s60_s17, %s60_s17 }
  0x3c   :  { %p634_p13 = scmp.ne.s32.totalorder %s60_s17, %s633_s1  ;;  %p639_p1 = scmp.lt.s32.totalorder %s633_s1, %s633_s1 }
  0x3e   :  { %p640_p2 = por %p639_p1, %p638_p0 }
  0x40   :  { %p641_p3 = pnand %p640_p2, %p634_p13 }
  0x42   :  { %644 = shalt.err (!%p641_p3)
}
  0x43   :  { %65 = dma.hbm_to_vmem [thread:$0]  %s828_s5, 2048, %s60_s17, [#allocation9], %s676_s11, %s676_s11, %s677_s12  }
  0x44   :  { %667 = dma.done.wait [#allocation3], 128  }
  0x45   :  { %668 = vsyncadd [#allocation3], 4294967168 }
  0x46   :  { %669 = dma.done.wait [#allocation6], 2304  }
  0x47   :  { %670 = vsyncadd [#allocation6], 4294964992 }
  0x48   :  { %671 = dma.done.wait [#allocation9], 2048  }
  0x49   :  { %672 = vsyncadd [#allocation9], 4294965248  ;;  %v681_v0 = vmov 0.0|0.0   ;;  %vm682_vm0 = vmmov 0   ;;  %v683_v1 = vmov 0.0   ;;  %v81_v2 = vld [vmem:[#allocation5] sm:$0xff] }
  0x4a   :  { %490 = vmatprep.subr.bf16.mxu0 %v681_v0  ;;  %417 = vmatprep.mubr.msk.f32.mxu0 %vm682_vm0, %v683_v1  ;;  %v82_v3 = vld [vmem:[#allocation5 + $0x8] sm:$0xff]  ;;  %v165_v5 = vld [vmem:[#allocation7] sm:$0xff]  ;;  %v166_v6 = vld [vmem:[#allocation7 + $0x8] sm:$0xff]  ;;  %vm90_vm1 = vcmask 130048   ;;  %s684_s28 = smov [#allocation10]  }
  0x4b   :  { %493 = vmatprep.subr.bf16.mxu1 %v681_v0  ;;  %452 = vmatprep.mubr.msk.f32.mxu1 %vm682_vm0, %v683_v1  ;;  %v491_v4 = vpack.c.bf16 %v82_v3, %v81_v2  ;;  %v167_v7 = vld [vmem:[#allocation7 + $0x10] sm:$0xff]  ;;  %v494_v8 = vpack.c.bf16 %v166_v6, %v165_v5  ;;  %v168_v9 = vld [vmem:[#allocation7 + $0x18] sm:$0xff]  ;;  %v80_v10 = vld [vmem:[#allocation2] sm:$0xff]  ;;  %s361_s29 = sshll.u32 %s684_s28, 4  ;;  %s362_s29 = int_to_ptr.vmem [resolvable:$true] %s361_s29 }
  0x4c   :  { %v497_v11 = vpack.c.bf16 %v168_v9, %v167_v7  ;;  %v169_v12 = vld [vmem:[#allocation7 + $0x20] sm:$0xff]  ;;  %v170_v13 = vld [vmem:[#allocation7 + $0x28] sm:$0xff]  ;;  %v171_v15 = vld [vmem:[#allocation7 + $0x30] sm:$0xff]  ;;  %p650_p5 = scmp.lt.s32.totalorder %s362_s29, %s362_s29 }
  0x4d   :  { %492 = vmatpush3.bf16.msra.mxu0 %v491_v4  ;;  %495 = vmatpush3.bf16.msra.mxu1 %v494_v8  ;;  %v500_v14 = vpack.c.bf16 %v170_v13, %v169_v12  ;;  %v172_v16 = vld [vmem:[#allocation7 + $0x38] sm:$0xff]  ;;  %v173_v18 = vld [vmem:[#allocation7 + $0x40] sm:$0xff]  ;;  %v174_v19 = vld [vmem:[#allocation7 + $0x48] sm:$0xff] }
  0x4e   :  { %517 = vmatprep.subr.bf16.mxu0 %v681_v0  ;;  %496 = vmatprep.subr.bf16.mxu1 %v681_v0  ;;  %v503_v17 = vpack.c.bf16 %v172_v16, %v171_v15  ;;  %v506_v20 = vpack.c.bf16 %v174_v19, %v173_v18  ;;  %v175_v21 = vld [vmem:[#allocation7 + $0x50] sm:$0xff]  ;;  %v176_v22 = vld [vmem:[#allocation7 + $0x58] sm:$0xff]  ;;  %v177_v24 = vld [vmem:[#allocation7 + $0x60] sm:$0xff] }
  0x4f   :  { %v509_v23 = vpack.c.bf16 %v176_v22, %v175_v21  ;;  %v178_v25 = vld [vmem:[#allocation7 + $0x68] sm:$0xff]  ;;  %v179_v27 = vld [vmem:[#allocation7 + $0x70] sm:$0xff]  ;;  %v180_v28 = vld [vmem:[#allocation7 + $0x78] sm:$0xff] }
  0x50   :  { %418 = vmatmul.mubr.msk.f32.vlgmr.msra.gmra.mrb[0].mxu0 %vm90_vm1, %v80_v10  ;;  %v512_v26 = vpack.c.bf16 %v178_v25, %v177_v24  ;;  %v515_v29 = vpack.c.bf16 %v180_v28, %v179_v27  ;;  %v259_v30 = vld [vmem:[#allocation8] sm:$0xff]  ;;  %v260_v31 = vld [vmem:[#allocation8 + $0x8] sm:$0xff]  ;;  %v261_v32 = vld [vmem:[#allocation8 + $0x10] sm:$0xff] }
  0x51   :  { %487 = vmatprep.mubr.msk.f32.mxu0 %vm682_vm0, %v683_v1  ;;  %498 = vmatpush3.bf16.msra.mxu1 %v497_v11  ;;  %v518_v33 = vpack.c.bf16 %v260_v31, %v259_v30  ;;  %v262_v34 = vld [vmem:[#allocation8 + $0x18] sm:$0xff]  ;;  %v263_v36 = vld [vmem:[#allocation8 + $0x20] sm:$0xff]  ;;  %v264_v37 = vld [vmem:[#allocation8 + $0x28] sm:$0xff] }
  0x52   :  { %499 = vmatprep.subr.bf16.mxu1 %v681_v0  ;;  %v521_v35 = vpack.c.bf16 %v262_v34, %v261_v32  ;;  %v524_v38 = vpack.c.bf16 %v264_v37, %v263_v36  ;;  %v265_v39 = vld [vmem:[#allocation8 + $0x30] sm:$0xff]  ;;  %v266_v40 = vld [vmem:[#allocation8 + $0x38] sm:$0xff]  ;;  %v267_v42 = vld [vmem:[#allocation8 + $0x40] sm:$0xff] }
  0x53   :  { %519 = vmatpush3.bf16.msra.mxu0 %v518_v33  ;;  %v527_v41 = vpack.c.bf16 %v266_v40, %v265_v39  ;;  %v268_v43 = vld [vmem:[#allocation8 + $0x48] sm:$0xff]  ;;  %v269_v50 = vld [vmem:[#allocation8 + $0x50] sm:$0xff]  ;;  %v270_v51 = vld [vmem:[#allocation8 + $0x58] sm:$0xff] }
  0x54   :  { %520 = vmatprep.subr.bf16.mxu0 %v681_v0  ;;  %v530_v44 = vpack.c.bf16 %v268_v43, %v267_v42  ;;  %v372_v45 = vld [vmem:[%s825_s2] ss:$0 sm:$0xff]  ;;  %v533_v52 = vpack.c.bf16 %v270_v51, %v269_v50  ;;  %v271_v53 = vld [vmem:[#allocation8 + $0x60] sm:$0xff]  ;;  %v273_v56 = vld [vmem:[#allocation8 + $0x70] sm:$0xff] }
  0x55   :  { %501 = vmatpush3.bf16.msra.mxu1 %v500_v14  ;;  %v272_v54 = vld [vmem:[#allocation8 + $0x68] sm:$0xff]  ;;  %v274_v57 = vld [vmem:[#allocation8 + $0x78] sm:$0xff] }
  0x56   :  { %502 = vmatprep.subr.bf16.mxu1 %v681_v0  ;;  %v536_v55 = vpack.c.bf16 %v272_v54, %v271_v53  ;;  %v539_v58 = vpack.c.bf16 %v274_v57, %v273_v56  ;;  %v374_v59 = vld [vmem:[%s827_s4] ss:$0 sm:$0xff]  ;;  %s645_s4 = scalar_lea.vmem %s362_s29, 128 }
  0x57   :  { %522 = vmatpush3.bf16.msra.mxu0 %v521_v35  ;;  %v375_v1 = vld [vmem:[%s829_s6] ss:$0 sm:$0xff]  ;;  %p646_p4 = scmp.ne.s32.totalorder %s362_s29, %s645_s4  ;;  %p651_p6 = scmp.lt.s32.totalorder %s645_s4, %s645_s4 }
  0x58   :  { %523 = vmatprep.subr.bf16.mxu0 %v681_v0 }
  0x59   :  { %504 = vmatpush3.bf16.msra.mxu1 %v503_v17  ;;  %p652_p7 = por %p651_p6, %p650_p5 }
  0x5a   :  { %505 = vmatprep.subr.bf16.mxu1 %v681_v0 }
  0x5b   :  { %525 = vmatpush3.bf16.msra.mxu0 %v524_v38  ;;  %p653_p8 = pnand %p652_p7, %p646_p4 }
  0x5c   :  { %526 = vmatprep.subr.bf16.mxu0 %v681_v0 }
  0x5d   :  { %507 = vmatpush3.bf16.msra.mxu1 %v506_v20 }
  0x5e   :  { %508 = vmatprep.subr.bf16.mxu1 %v681_v0 }
  0x5f   :  { %528 = vmatpush3.bf16.msra.mxu0 %v527_v41 }
  0x60   :  { %529 = vmatprep.subr.bf16.mxu0 %v681_v0 }
  0x61   :  { %510 = vmatpush3.bf16.msra.mxu1 %v509_v23 }
  0x62   :  { %511 = vmatprep.subr.bf16.mxu1 %v681_v0 }
  0x63   :  { %531 = vmatpush3.bf16.msra.mxu0 %v530_v44 }
  0x64   :  { %532 = vmatprep.subr.bf16.mxu0 %v681_v0 }
  0x65   :  { %513 = vmatpush3.bf16.msra.mxu1 %v512_v26 }
  0x66   :  { %514 = vmatprep.subr.bf16.mxu1 %v681_v0 }
  0x67   :  { %534 = vmatpush3.bf16.msra.mxu0 %v533_v52 }
  0x68   :  { %535 = vmatprep.subr.bf16.mxu0 %v681_v0 }
  0x69   :  { %516 = vmatpush3.bf16.msra.mxu1 %v515_v29 }
  0x6b   :  { %537 = vmatpush3.bf16.msra.mxu0 %v536_v55 }
  0x6c   :  { %538 = vmatprep.subr.bf16.mxu0 %v681_v0 }
  0x6f   :  { %540 = vmatpush3.bf16.msra.mxu0 %v539_v58 }
 0x123   :  { %v160_v46 = vpop.f32.mrb[0].mxu0 }
 0x124   :  { %v161_v47 = vadd.f32 %v372_v45, %v160_v46  ;;  %v419_v48 = vpop.f32.mrb[1].mxu0 }
 0x126   :  { %551 = vtanh.f32 %v161_v47 }
 0x130   :  { %v552_v49 = vpop.eup %551 }
 0x131   :  { %453 = vmatmul.mubr.f32.vlgmr.msra.gmra.mrb[0].mxu1 %v552_v49 }
 0x204   :  { %v254_v60 = vpop.f32.mrb[0].mxu1 }
 0x205   :  { %v255_v61 = vadd.f32 %v374_v59, %v254_v60  ;;  %v454_v62 = vpop.f32.mrb[1].mxu1 }
 0x207   :  { %553 = vtanh.f32 %v255_v61 }
 0x211   :  { %v554_v63 = vpop.eup %553 }
 0x212   :  { %488 = vmatmul.mubr.f32.vlgmr.msra.gmra.mrb[2].mxu0 %v554_v63 }
 0x2e5   :  { %v348_v2 = vpop.f32.mrb[2].mxu0 }
 0x2e6   :  { %v349_v3 = vadd.f32 %v375_v1, %v348_v2  ;;  %v489_v4 = vpop.f32.mrb[3].mxu0 }
 0x2e8   :  { %555 = vtanh.f32 %v349_v3 }
 0x2f2   :  { %v556_v0 = vpop.eup %555 }
 0x2f3   :  { %v353_v5 = vmul.f32 2.0, %v556_v0 }
 0x2f5   :  { %354 = vst [vmem:[#allocation10] sm:$0xff] %v353_v5 }
 0x2f6   :  { %656 = shalt.err (!%p653_p8)
}
 0x2f7   :  { %s657_s6 = scalar_lea.hbm %s830_s7, 128 }
 0x2f8   :  { %p658_p9 = scmp.ne.s32.totalorder %s830_s7, %s657_s6  ;;  %p661_p10 = scmp.lt.u32.totalorder %s657_s6, %s830_s7 }
 0x2fa   :  { %p663_p11 = pnand %p661_p10, %p658_p9 }
 0x2fc   :  { %666 = shalt.err (!%p663_p11)
}
 0x2fd   :  { %364 = dma.vmem_to_hbm [thread:$0]  %s362_s29, 128, %s830_s7, [#allocation4]  }
 0x2fe   :  { %673 = dma.done.wait [#allocation4], 128  }
 0x2ff   :  { %674 = vsyncadd [#allocation4], 4294967168 }
 0x300   :  { %368 = vsyncpa [#allocation3], 1 }
 0x301   :  { %369 = vsyncpa [#allocation6], 1 }
 0x302   :  { %370 = vsyncpa [#allocation9], 1 }
 0x303   :  { %371 = vsyncpa [#allocation4], 1 }

// kernel: tpu_custom_call.1
= control target key start
LH: loop header
LB: loop body
LE: loop exit
PB: predicated region body
PF: predicated region fallthrough
CT: control target
= control target key end

     0   :  { %12 = vsyncpa [#allocation3], 0  ;;  %s823_s0 = inlined_call_operand.hbm [shape: f32[8,16], index: 0, kind: input, shape index: {}]   ;;  %s824_s1 = inlined_call_operand.hbm [shape: f32[16,128], index: 1, kind: input, shape index: {}]   ;;  %s825_s2 = inlined_call_operand.vmem [shape: f32[1,128], index: 2, kind: input, shape index: {}]   ;;  %s826_s3 = inlined_call_operand.hbm [shape: f32[128,128], index: 3, kind: input, shape index: {}]   ;;  %s827_s4 = inlined_call_operand.vmem [shape: f32[1,128], index: 4, kind: input, shape index: {}]   ;;  %s828_s5 = inlined_call_operand.hbm [shape: f32[128,128], index: 5, kind: input, shape index: {}]   ;;  %s829_s6 = inlined_call_operand.vmem [shape: f32[1,128], index: 6, kind: input, shape index: {}]   ;;  %s830_s7 = inlined_call_operand.hbm [shape: f32[8,128], index: 7, kind: output, shape index: {}]  }
   0x1   :  { %13 = vsyncpa [#allocation6], 0 }
   0x2   :  { %14 = vsyncpa [#allocation9], 0 }
   0x3   :  { %15 = vsyncpa [#allocation4], 0  ;;  %s675_s24 = smov [#allocation5]   ;;  %s557_s28 = scalar_lea.hbm %s824_s1, 256 }
   0x4   :  { %s31_s25 = sshll.u32 %s675_s24, 4  ;;  %p558_p0 = scmp.ne.s32.totalorder %s824_s1, %s557_s28  ;;  %s32_s25 = int_to_ptr.vmem [resolvable:$true] %s31_s25 }
   0x5   :  { %p561_p1 = scmp.lt.u32.totalorder %s557_s28, %s824_s1 }
   0x7   :  { %p563_p2 = pnand %p561_p1, %p558_p0 }
   0x9   :  { %566 = shalt.err (!%p563_p2)
}
   0xa   :  { %s567_s10 = scalar_lea.vmem %s32_s25, 256  ;;  %p572_p4 = scmp.lt.s32.totalorder %s32_s25, %s32_s25 }
   0xb   :  { %p568_p3 = scmp.ne.s32.totalorder %s32_s25, %s567_s10  ;;  %p573_p5 = scmp.lt.s32.totalorder %s567_s10, %s567_s10 }
   0xd   :  { %p574_p6 = por %p573_p5, %p572_p4 }
   0xf   :  { %p575_p7 = pnand %p574_p6, %p568_p3 }
  0x11   :  { %578 = shalt.err (!%p575_p7)
}
  0x12   :  { %s676_s11 = smov 128   ;;  %s677_s12 = smov 8  }
  0x13   :  { %37 = dma.hbm_to_vmem [thread:$0]  %s824_s1, 256, %s32_s25, [#allocation6], %s676_s11, %s676_s11, %s677_s12  }
  0x14   :  { %s678_s15 = smov [#allocation2]   ;;  %s679_s17 = smov [#allocation7]  }
  0x15   :  { %s22_s16 = sshll.u32 %s678_s15, 4  ;;  %s45_s18 = sshll.u32 %s679_s17, 4  ;;  %s23_s16 = int_to_ptr.vmem [resolvable:$true] %s22_s16  ;;  %s46_s18 = int_to_ptr.vmem [resolvable:$true] %s45_s18 }
  0x16   :  { %s579_s21 = scalar_lea.hbm %s823_s0, 128 }
  0x17   :  { %p580_p8 = scmp.ne.s32.totalorder %s823_s0, %s579_s21  ;;  %p583_p9 = scmp.lt.u32.totalorder %s579_s21, %s823_s0 }
  0x19   :  { %p585_p10 = pnand %p583_p9, %p580_p8 }
  0x1b   :  { %588 = shalt.err (!%p585_p10)
}
  0x1c   :  { %s589_s1 = scalar_lea.vmem %s23_s16, 128  ;;  %p594_p12 = scmp.lt.s32.totalorder %s23_s16, %s23_s16 }
  0x1d   :  { %p590_p11 = scmp.ne.s32.totalorder %s23_s16, %s589_s1  ;;  %p595_p13 = scmp.lt.s32.totalorder %s589_s1, %s589_s1 }
  0x1f   :  { %p596_p0 = por %p595_p13, %p594_p12 }
  0x21   :  { %p597_p1 = pnand %p596_p0, %p590_p11 }
  0x23   :  { %600 = shalt.err (!%p597_p1)
}
  0x24   :  { %25 = dma.hbm_to_vmem [thread:$0]  %s823_s0, 128, %s23_s16, [#allocation3]  }
  0x25   :  { %s601_s30 = scalar_lea.hbm %s826_s3, 2048 }
  0x26   :  { %p602_p2 = scmp.ne.s32.totalorder %s826_s3, %s601_s30  ;;  %p605_p3 = scmp.lt.u32.totalorder %s601_s30, %s826_s3 }
  0x28   :  { %p607_p4 = pnand %p605_p3, %p602_p2 }
  0x2a   :  { %610 = shalt.err (!%p607_p4)
}
  0x2b   :  { %s611_s14 = scalar_lea.vmem %s46_s18, 2048  ;;  %p616_p6 = scmp.lt.s32.totalorder %s46_s18, %s46_s18 }
  0x2c   :  { %p612_p5 = scmp.ne.s32.totalorder %s46_s18, %s611_s14  ;;  %p617_p7 = scmp.lt.s32.totalorder %s611_s14, %s611_s14 }
  0x2e   :  { %p618_p8 = por %p617_p7, %p616_p6 }
  0x30   :  { %p619_p9 = pnand %p618_p8, %p612_p5 }
  0x32   :  { %622 = shalt.err (!%p619_p9)
}
  0x33   :  { %51 = dma.hbm_to_vmem [thread:$0]  %s826_s3, 2048, %s46_s18, [#allocation6], %s676_s11, %s676_s11, %s677_s12  }
  0x34   :  { %s680_s16 = smov [#allocation8]   ;;  %s623_s21 = scalar_lea.hbm %s828_s5, 2048 }
  0x35   :  { %s59_s17 = sshll.u32 %s680_s16, 4  ;;  %p624_p10 = scmp.ne.s32.totalorder %s828_s5, %s623_s21  ;;  %s60_s17 = int_to_ptr.vmem [resolvable:$true] %s59_s17 }
  0x36   :  { %p627_p11 = scmp.lt.u32.totalorder %s623_s21, %s828_s5 }
  0x38   :  { %p629_p12 = pnand %p627_p11, %p624_p10 }
  0x3a   :  { %632 = shalt.err (!%p629_p12)
}
  0x3b   :  { %s633_s1 = scalar_lea.vmem %s60_s17, 2048  ;;  %p638_p0 = scmp.lt.s32.totalorder %s60_s17, %s60_s17 }
  0x3c   :  { %p634_p13 = scmp.ne.s32.totalorder %s60_s17, %s633_s1  ;;  %p639_p1 = scmp.lt.s32.totalorder %s633_s1, %s633_s1 }
  0x3e   :  { %p640_p2 = por %p639_p1, %p638_p0 }
  0x40   :  { %p641_p3 = pnand %p640_p2, %p634_p13 }
  0x42   :  { %644 = shalt.err (!%p641_p3)
}
  0x43   :  { %65 = dma.hbm_to_vmem [thread:$0]  %s828_s5, 2048, %s60_s17, [#allocation9], %s676_s11, %s676_s11, %s677_s12  }
  0x44   :  { %667 = dma.done.wait [#allocation3], 128  }
  0x45   :  { %668 = vsyncadd [#allocation3], 4294967168 }
  0x46   :  { %669 = dma.done.wait [#allocation6], 2304  }
  0x47   :  { %670 = vsyncadd [#allocation6], 4294964992 }
  0x48   :  { %671 = dma.done.wait [#allocation9], 2048  }
  0x49   :  { %672 = vsyncadd [#allocation9], 4294965248  ;;  %v681_v0 = vmov 0.0|0.0   ;;  %vm682_vm0 = vmmov 0   ;;  %v683_v1 = vmov 0.0   ;;  %v81_v2 = vld [vmem:[#allocation5] sm:$0xff] }
  0x4a   :  { %490 = vmatprep.subr.bf16.mxu0 %v681_v0  ;;  %417 = vmatprep.mubr.msk.f32.mxu0 %vm682_vm0, %v683_v1  ;;  %v82_v3 = vld [vmem:[#allocation5 + $0x8] sm:$0xff]  ;;  %v165_v5 = vld [vmem:[#allocation7] sm:$0xff]  ;;  %v166_v6 = vld [vmem:[#allocation7 + $0x8] sm:$0xff]  ;;  %vm90_vm1 = vcmask 130048   ;;  %s684_s28 = smov [#allocation10]  }
  0x4b   :  { %493 = vmatprep.subr.bf16.mxu1 %v681_v0  ;;  %452 = vmatprep.mubr.msk.f32.mxu1 %vm682_vm0, %v683_v1  ;;  %v491_v4 = vpack.c.bf16 %v82_v3, %v81_v2  ;;  %v167_v7 = vld [vmem:[#allocation7 + $0x10] sm:$0xff]  ;;  %v494_v8 = vpack.c.bf16 %v166_v6, %v165_v5  ;;  %v168_v9 = vld [vmem:[#allocation7 + $0x18] sm:$0xff]  ;;  %v80_v10 = vld [vmem:[#allocation2] sm:$0xff]  ;;  %s361_s29 = sshll.u32 %s684_s28, 4  ;;  %s362_s29 = int_to_ptr.vmem [resolvable:$true] %s361_s29 }
  0x4c   :  { %v497_v11 = vpack.c.bf16 %v168_v9, %v167_v7  ;;  %v169_v12 = vld [vmem:[#allocation7 + $0x20] sm:$0xff]  ;;  %v170_v13 = vld [vmem:[#allocation7 + $0x28] sm:$0xff]  ;;  %v171_v15 = vld [vmem:[#allocation7 + $0x30] sm:$0xff]  ;;  %p650_p5 = scmp.lt.s32.totalorder %s362_s29, %s362_s29 }
  0x4d   :  { %492 = vmatpush3.bf16.msra.mxu0 %v491_v4  ;;  %495 = vmatpush3.bf16.msra.mxu1 %v494_v8  ;;  %v500_v14 = vpack.c.bf16 %v170_v13, %v169_v12  ;;  %v172_v16 = vld [vmem:[#allocation7 + $0x38] sm:$0xff]  ;;  %v173_v18 = vld [vmem:[#allocation7 + $0x40] sm:$0xff]  ;;  %v174_v19 = vld [vmem:[#allocation7 + $0x48] sm:$0xff] }
  0x4e   :  { %517 = vmatprep.subr.bf16.mxu0 %v681_v0  ;;  %496 = vmatprep.subr.bf16.mxu1 %v681_v0  ;;  %v503_v17 = vpack.c.bf16 %v172_v16, %v171_v15  ;;  %v506_v20 = vpack.c.bf16 %v174_v19, %v173_v18  ;;  %v175_v21 = vld [vmem:[#allocation7 + $0x50] sm:$0xff]  ;;  %v176_v22 = vld [vmem:[#allocation7 + $0x58] sm:$0xff]  ;;  %v177_v24 = vld [vmem:[#allocation7 + $0x60] sm:$0xff] }
  0x4f   :  { %v509_v23 = vpack.c.bf16 %v176_v22, %v175_v21  ;;  %v178_v25 = vld [vmem:[#allocation7 + $0x68] sm:$0xff]  ;;  %v179_v27 = vld [vmem:[#allocation7 + $0x70] sm:$0xff]  ;;  %v180_v28 = vld [vmem:[#allocation7 + $0x78] sm:$0xff] }
  0x50   :  { %418 = vmatmul.mubr.msk.f32.vlgmr.msra.gmra.mrb[0].mxu0 %vm90_vm1, %v80_v10  ;;  %v512_v26 = vpack.c.bf16 %v178_v25, %v177_v24  ;;  %v515_v29 = vpack.c.bf16 %v180_v28, %v179_v27  ;;  %v259_v30 = vld [vmem:[#allocation8] sm:$0xff]  ;;  %v260_v31 = vld [vmem:[#allocation8 + $0x8] sm:$0xff]  ;;  %v261_v32 = vld [vmem:[#allocation8 + $0x10] sm:$0xff] }
  0x51   :  { %487 = vmatprep.mubr.msk.f32.mxu0 %vm682_vm0, %v683_v1  ;;  %498 = vmatpush3.bf16.msra.mxu1 %v497_v11  ;;  %v518_v33 = vpack.c.bf16 %v260_v31, %v259_v30  ;;  %v262_v34 = vld [vmem:[#allocation8 + $0x18] sm:$0xff]  ;;  %v263_v36 = vld [vmem:[#allocation8 + $0x20] sm:$0xff]  ;;  %v264_v37 = vld [vmem:[#allocation8 + $0x28] sm:$0xff] }
  0x52   :  { %499 = vmatprep.subr.bf16.mxu1 %v681_v0  ;;  %v521_v35 = vpack.c.bf16 %v262_v34, %v261_v32  ;;  %v524_v38 = vpack.c.bf16 %v264_v37, %v263_v36  ;;  %v265_v39 = vld [vmem:[#allocation8 + $0x30] sm:$0xff]  ;;  %v266_v40 = vld [vmem:[#allocation8 + $0x38] sm:$0xff]  ;;  %v267_v42 = vld [vmem:[#allocation8 + $0x40] sm:$0xff] }
  0x53   :  { %519 = vmatpush3.bf16.msra.mxu0 %v518_v33  ;;  %v527_v41 = vpack.c.bf16 %v266_v40, %v265_v39  ;;  %v268_v43 = vld [vmem:[#allocation8 + $0x48] sm:$0xff]  ;;  %v269_v50 = vld [vmem:[#allocation8 + $0x50] sm:$0xff]  ;;  %v270_v51 = vld [vmem:[#allocation8 + $0x58] sm:$0xff] }
  0x54   :  { %520 = vmatprep.subr.bf16.mxu0 %v681_v0  ;;  %v530_v44 = vpack.c.bf16 %v268_v43, %v267_v42  ;;  %v372_v45 = vld [vmem:[%s825_s2] ss:$0 sm:$0xff]  ;;  %v533_v52 = vpack.c.bf16 %v270_v51, %v269_v50  ;;  %v271_v53 = vld [vmem:[#allocation8 + $0x60] sm:$0xff]  ;;  %v273_v56 = vld [vmem:[#allocation8 + $0x70] sm:$0xff] }
  0x55   :  { %501 = vmatpush3.bf16.msra.mxu1 %v500_v14  ;;  %v272_v54 = vld [vmem:[#allocation8 + $0x68] sm:$0xff]  ;;  %v274_v57 = vld [vmem:[#allocation8 + $0x78] sm:$0xff] }
  0x56   :  { %502 = vmatprep.subr.bf16.mxu1 %v681_v0  ;;  %v536_v55 = vpack.c.bf16 %v272_v54, %v271_v53  ;;  %v539_v58 = vpack.c.bf16 %v274_v57, %v273_v56  ;;  %v374_v59 = vld [vmem:[%s827_s4] ss:$0 sm:$0xff]  ;;  %s645_s4 = scalar_lea.vmem %s362_s29, 128 }
  0x57   :  { %522 = vmatpush3.bf16.msra.mxu0 %v521_v35  ;;  %v375_v1 = vld [vmem:[%s829_s6] ss:$0 sm:$0xff]  ;;  %p646_p4 = scmp.ne.s32.totalorder %s362_s29, %s645_s4  ;;  %p651_p6 = scmp.lt.s32.totalorder %s645_s4, %s645_s4 }
  0x58   :  { %523 = vmatprep.subr.bf16.mxu0 %v681_v0 }
  0x59   :  { %504 = vmatpush3.bf16.msra.mxu1 %v503_v17  ;;  %p652_p7 = por %p651_p6, %p650_p5 }
  0x5a   :  { %505 = vmatprep.subr.bf16.mxu1 %v681_v0 }
  0x5b   :  { %525 = vmatpush3.bf16.msra.mxu0 %v524_v38  ;;  %p653_p8 = pnand %p652_p7, %p646_p4 }
  0x5c   :  { %526 = vmatprep.subr.bf16.mxu0 %v681_v0 }
  0x5d   :  { %507 = vmatpush3.bf16.msra.mxu1 %v506_v20 }
  0x5e   :  { %508 = vmatprep.subr.bf16.mxu1 %v681_v0 }
  0x5f   :  { %528 = vmatpush3.bf16.msra.mxu0 %v527_v41 }
  0x60   :  { %529 = vmatprep.subr.bf16.mxu0 %v681_v0 }
  0x61   :  { %510 = vmatpush3.bf16.msra.mxu1 %v509_v23 }
  0x62   :  { %511 = vmatprep.subr.bf16.mxu1 %v681_v0 }
  0x63   :  { %531 = vmatpush3.bf16.msra.mxu0 %v530_v44 }
  0x64   :  { %532 = vmatprep.subr.bf16.mxu0 %v681_v0 }
  0x65   :  { %513 = vmatpush3.bf16.msra.mxu1 %v512_v26 }
  0x66   :  { %514 = vmatprep.subr.bf16.mxu1 %v681_v0 }
  0x67   :  { %534 = vmatpush3.bf16.msra.mxu0 %v533_v52 }
  0x68   :  { %535 = vmatprep.subr.bf16.mxu0 %v681_v0 }
  0x69   :  { %516 = vmatpush3.bf16.msra.mxu1 %v515_v29 }
  0x6b   :  { %537 = vmatpush3.bf16.msra.mxu0 %v536_v55 }
  0x6c   :  { %538 = vmatprep.subr.bf16.mxu0 %v681_v0 }
  0x6f   :  { %540 = vmatpush3.bf16.msra.mxu0 %v539_v58 }
 0x123   :  { %v160_v46 = vpop.f32.mrb[0].mxu0 }
 0x124   :  { %v161_v47 = vadd.f32 %v372_v45, %v160_v46  ;;  %v419_v48 = vpop.f32.mrb[1].mxu0 }
 0x126   :  { %551 = vtanh.f32 %v161_v47 }
 0x130   :  { %v552_v49 = vpop.eup %551 }
 0x131   :  { %453 = vmatmul.mubr.f32.vlgmr.msra.gmra.mrb[0].mxu1 %v552_v49 }
 0x204   :  { %v254_v60 = vpop.f32.mrb[0].mxu1 }
 0x205   :  { %v255_v61 = vadd.f32 %v374_v59, %v254_v60  ;;  %v454_v62 = vpop.f32.mrb[1].mxu1 }
 0x207   :  { %553 = vtanh.f32 %v255_v61 }
 0x211   :  { %v554_v63 = vpop.eup %553 }
 0x212   :  { %488 = vmatmul.mubr.f32.vlgmr.msra.gmra.mrb[2].mxu0 %v554_v63 }
 0x2e5   :  { %v348_v2 = vpop.f32.mrb[2].mxu0 }
 0x2e6   :  { %v349_v3 = vadd.f32 %v375_v1, %v348_v2  ;;  %v489_v4 = vpop.f32.mrb[3].mxu0 }
 0x2e8   :  { %555 = vtanh.f32 %v349_v3 }
 0x2f2   :  { %v556_v0 = vpop.eup %555 }
 0x2f3   :  { %v353_v5 = vmul.f32 2.0, %v556_v0 }
 0x2f5   :  { %354 = vst [vmem:[#allocation10] sm:$0xff] %v353_v5 }
 0x2f6   :  { %656 = shalt.err (!%p653_p8)
}
 0x2f7   :  { %s657_s6 = scalar_lea.hbm %s830_s7, 128 }
 0x2f8   :  { %p658_p9 = scmp.ne.s32.totalorder %s830_s7, %s657_s6  ;;  %p661_p10 = scmp.lt.u32.totalorder %s657_s6, %s830_s7 }
 0x2fa   :  { %p663_p11 = pnand %p661_p10, %p658_p9 }
 0x2fc   :  { %666 = shalt.err (!%p663_p11)
}
 0x2fd   :  { %364 = dma.vmem_to_hbm [thread:$0]  %s362_s29, 128, %s830_s7, [#allocation4]  }
 0x2fe   :  { %673 = dma.done.wait [#allocation4], 128  }
 0x2ff   :  { %674 = vsyncadd [#allocation4], 4294967168 }
 0x300   :  { %368 = vsyncpa [#allocation3], 1 }
 0x301   :  { %369 = vsyncpa [#allocation6], 1 }
 0x302   :  { %370 = vsyncpa [#allocation9], 1 }
 0x303   :  { %371 = vsyncpa [#allocation4], 1 }

</bundles_post_ra>
